<compile_context>
chip_gen: v7x
topology: tpu7x:2x2x1
jax: 0.10.0
libtpu: 0.0.40
codegen_flags: <defaults>
</compile_context>

<pallas_src>
import math

import jax
import jax.numpy as jnp
from jax.experimental import pallas as pl
from jax.experimental.pallas import tpu as pltpu

HIDDEN = 30       # logical hidden size from the PyTorch module
HIDDEN_PAD = 32   # padded (zero-filled) hidden size used inside the kernel


def _bp_kernel(x_ref, w1_ref, b1_ref, w2_ref, b2_ref, o_ref):
    # Hidden layer: relu(x @ W1 + b1), all f32 (MXU accumulates in f32).
    h = jnp.dot(x_ref[...], w1_ref[...], preferred_element_type=jnp.float32)
    h = jnp.maximum(h + b1_ref[...], 0.0)
    # Output layer: h @ W2 + b2.
    q = jnp.dot(h, w2_ref[...], preferred_element_type=jnp.float32)
    o_ref[...] = (q + b2_ref[...]).astype(o_ref.dtype)


def bp_network_forward(x, w1_t, b1, w2_t, b2, *, block_b=512):
    """x: (B, input_size) f32; w1_t: (input_size, HIDDEN_PAD); b1: (1, HIDDEN_PAD);
    w2_t: (HIDDEN_PAD, output_size); b2: (1, output_size). Returns (B, output_size) f32."""
    B, in_size = x.shape
    hid = w1_t.shape[1]
    out_size = w2_t.shape[1]

    # Batch tile: multiple of 8 sublanes (f32), capped at the rounded-up batch.
    tb = min(block_b, pl.cdiv(B, 8) * 8)
    tb = max(8, (tb // 8) * 8)
    grid = (pl.cdiv(B, tb),)   # ragged last block handled by Pallas masking

    out = pl.pallas_call(
        _bp_kernel,
        out_shape=jax.ShapeDtypeStruct((B, out_size), jnp.float32),
        grid=grid,
        in_specs=[
            # x: one batch tile per grid step (f32, streamed directly from HBM).
            pl.BlockSpec((tb, in_size), lambda i: (i, 0)),
            # Weights / biases: constant block index -> VMEM-resident across steps.
            pl.BlockSpec((in_size, hid), lambda i: (0, 0)),
            pl.BlockSpec((1, hid), lambda i: (0, 0)),
            pl.BlockSpec((hid, out_size), lambda i: (0, 0)),
            pl.BlockSpec((1, out_size), lambda i: (0, 0)),
        ],
        out_specs=pl.BlockSpec((tb, out_size), lambda i: (i, 0)),
        compiler_params=pltpu.CompilerParams(
            dimension_semantics=("parallel",),
        ),
    )(x, w1_t, b1, w2_t, b2)
    return out


def init_bp_params(key, input_size, output_size,
                   hidden=HIDDEN, hidden_pad=HIDDEN_PAD):
    """Mirror torch.nn.Linear default init: U(-1/sqrt(fan_in), 1/sqrt(fan_in)) for
    weight and bias. Weights stored pre-transposed (fan_in, fan_out); the hidden
    dimension is zero-padded 30 -> 32, which leaves the forward pass unchanged."""
    k1, k2, k3, k4 = jax.random.split(key, 4)
    bound1 = 1.0 / math.sqrt(input_size)
    bound2 = 1.0 / math.sqrt(hidden)
    w1_t = jax.random.uniform(k1, (input_size, hidden), jnp.float32, -bound1, bound1)
    b1 = jax.random.uniform(k2, (1, hidden), jnp.float32, -bound1, bound1)
    w2_t = jax.random.uniform(k3, (hidden, output_size), jnp.float32, -bound2, bound2)
    b2 = jax.random.uniform(k4, (1, output_size), jnp.float32, -bound2, bound2)
    pad = hidden_pad - hidden
    w1_t = jnp.pad(w1_t, ((0, 0), (0, pad)))   # extra hidden units get zero weights,
    b1 = jnp.pad(b1, ((0, 0), (0, pad)))       # zero bias -> relu(0)=0,
    w2_t = jnp.pad(w2_t, ((0, pad), (0, 0)))   # and zero output rows -> no effect.
    return w1_t, b1, w2_t, b2


if __name__ == "__main__":
    input_size = 32
    output_size = 4
    batch = 1000   # not a multiple of the batch tile -> exercises masked partial block

    key = jax.random.PRNGKey(0)
    kx, kp = jax.random.split(key)
    x = jax.random.normal(kx, (batch, input_size), jnp.float32)
    w1_t, b1, w2_t, b2 = init_bp_params(kp, input_size, output_size)

    # block_b=512 -> grid = cdiv(1000, 512) = 2 steps (even split for v7x's 2 TCs).
    q_values = bp_network_forward(x, w1_t, b1, w2_t, b2, block_b=512)
    jax.block_until_ready(q_values)

    # Pure-f32 reference matching the PyTorch module's forward pass.
    # (Tolerance allows for the MXU's default-precision f32 matmul decomposition.)
    h = jnp.maximum(x @ w1_t + b1, 0.0)
    ref = h @ w2_t + b2

    assert q_values.shape == (batch, output_size)
    assert jnp.allclose(q_values, ref, atol=1e-2, rtol=1e-2), float(
        jnp.max(jnp.abs(q_values - ref)))

    print("KERNEL_OK")
</pallas_src>

<mosaic_0001>
module attributes {stable_mosaic.version = 11 : i64} {
  func.func @_bp_kernel(%arg0: i32, %arg1: memref<512x32xf32, #tpu.memory_space<vmem>>, %arg2: memref<32x32xf32, #tpu.memory_space<vmem>>, %arg3: memref<1x32xf32, #tpu.memory_space<vmem>>, %arg4: memref<32x4xf32, #tpu.memory_space<vmem>>, %arg5: memref<1x4xf32, #tpu.memory_space<vmem>>, %arg6: memref<512x4xf32, #tpu.memory_space<vmem>>) attributes {dimension_semantics = [#tpu.dimension_semantics<parallel>], iteration_bounds = array<i64: 2>, scalar_prefetch = 0 : i64, scratch_operands = 0 : i64, tpu.core_type = #tpu.core_type<tc>, window_params = [{transform_indices = @transform_0, window_bounds = array<i64: 512, 32>}, {pipeline_mode = #tpu.pipeline_mode<synchronous>, transform_indices = @transform_1, window_bounds = array<i64: 32, 32>}, {pipeline_mode = #tpu.pipeline_mode<synchronous>, transform_indices = @transform_2, window_bounds = array<i64: 1, 32>}, {pipeline_mode = #tpu.pipeline_mode<synchronous>, transform_indices = @transform_3, window_bounds = array<i64: 32, 4>}, {pipeline_mode = #tpu.pipeline_mode<synchronous>, transform_indices = @transform_4, window_bounds = array<i64: 1, 4>}, {transform_indices = @transform_5, window_bounds = array<i64: 512, 4>}]} {
    %c0 = arith.constant 0 : index
    %c0_0 = arith.constant 0 : index
    %0 = vector.load %arg1[%c0, %c0_0] : memref<512x32xf32, #tpu.memory_space<vmem>>, vector<512x32xf32>
    %c0_1 = arith.constant 0 : index
    %c0_2 = arith.constant 0 : index
    %1 = vector.load %arg2[%c0_1, %c0_2] : memref<32x32xf32, #tpu.memory_space<vmem>>, vector<32x32xf32>
    %cst = arith.constant dense<0.000000e+00> : vector<512x32xf32>
    %2 = tpu.matmul %0, %1, %cst {dimension_numbers = #tpu.dot_dimension_numbers<[1], [0], [0], [1], [0, 0, 1, 1], [], []>} : vector<512x32xf32>, vector<32x32xf32>, vector<512x32xf32> -> vector<512x32xf32>
    %c0_3 = arith.constant 0 : index
    %c0_4 = arith.constant 0 : index
    %3 = vector.load %arg3[%c0_3, %c0_4] : memref<1x32xf32, #tpu.memory_space<vmem>>, vector<1x32xf32>
    %4 = vector.broadcast %3 : vector<1x32xf32> to vector<512x32xf32>
    %5 = arith.addf %2, %4 : vector<512x32xf32>
    %cst_5 = arith.constant 0.000000e+00 : f32
    %6 = vector.broadcast %cst_5 : f32 to vector<512x32xf32>
    %7 = arith.maximumf %5, %6 : vector<512x32xf32>
    %c0_6 = arith.constant 0 : index
    %c0_7 = arith.constant 0 : index
    %8 = vector.load %arg4[%c0_6, %c0_7] : memref<32x4xf32, #tpu.memory_space<vmem>>, vector<32x4xf32>
    %cst_8 = arith.constant dense<0.000000e+00> : vector<512x4xf32>
    %9 = tpu.matmul %7, %8, %cst_8 {dimension_numbers = #tpu.dot_dimension_numbers<[1], [0], [0], [1], [0, 0, 1, 1], [], []>} : vector<512x32xf32>, vector<32x4xf32>, vector<512x4xf32> -> vector<512x4xf32>
    %c0_9 = arith.constant 0 : index
    %c0_10 = arith.constant 0 : index
    %10 = vector.load %arg5[%c0_9, %c0_10] : memref<1x4xf32, #tpu.memory_space<vmem>>, vector<1x4xf32>
    %11 = vector.broadcast %10 : vector<1x4xf32> to vector<512x4xf32>
    %12 = arith.addf %9, %11 : vector<512x4xf32>
    %c0_11 = arith.constant 0 : index
    %c0_12 = arith.constant 0 : index
    %13 = vector.load %arg6[%c0_11, %c0_12] : memref<512x4xf32, #tpu.memory_space<vmem>>, vector<512x4xf32>
    tpu.vector_store %arg6[%c0_11, %c0_12], %12 {strides = array<i32>} : memref<512x4xf32, #tpu.memory_space<vmem>>, vector<512x4xf32>,
    return
  }
  func.func @transform_0(%arg0: i32) -> (i32, i32) {
    %c0_i32 = arith.constant 0 : i32
    %c0_i32_0 = arith.constant 0 : i32
    return %arg0, %c0_i32 : i32, i32
  }
  func.func @transform_1(%arg0: i32) -> (i32, i32) {
    %c0_i32 = arith.constant 0 : i32
    %c0_i32_0 = arith.constant 0 : i32
    %c0_i32_1 = arith.constant 0 : i32
    return %c0_i32, %c0_i32_0 : i32, i32
  }
  func.func @transform_2(%arg0: i32) -> (i32, i32) {
    %c0_i32 = arith.constant 0 : i32
    %c0_i32_0 = arith.constant 0 : i32
    %c0_i32_1 = arith.constant 0 : i32
    return %c0_i32, %c0_i32_0 : i32, i32
  }
  func.func @transform_3(%arg0: i32) -> (i32, i32) {
    %c0_i32 = arith.constant 0 : i32
    %c0_i32_0 = arith.constant 0 : i32
    %c0_i32_1 = arith.constant 0 : i32
    return %c0_i32, %c0_i32_0 : i32, i32
  }
  func.func @transform_4(%arg0: i32) -> (i32, i32) {
    %c0_i32 = arith.constant 0 : i32
    %c0_i32_0 = arith.constant 0 : i32
    %c0_i32_1 = arith.constant 0 : i32
    return %c0_i32, %c0_i32_0 : i32, i32
  }
  func.func @transform_5(%arg0: i32) -> (i32, i32) {
    %c0_i32 = arith.constant 0 : i32
    %c0_i32_0 = arith.constant 0 : i32
    return %arg0, %c0_i32 : i32, i32
  }
}

</mosaic_0001>

<bundles_post_ra>
// kernel: tpu_custom_call.1
= control target key start
LH: loop header
LB: loop body
LE: loop exit
PB: predicated region body
PF: predicated region fallthrough
CT: control target
= control target key end

     0   :  { %s2806_s18 = smov 0   ;;  %s2808_s19 = smov 0   ;;  %s3536_s0 = inlined_call_operand.vmem [shape: f32[1000,32], index: 0, kind: input, shape index: {}]   ;;  %s3537_s1 = inlined_call_operand.vmem [shape: f32[32,32], index: 1, kind: input, shape index: {}]   ;;  %s3538_s2 = inlined_call_operand.vmem [shape: f32[1,32], index: 2, kind: input, shape index: {}]   ;;  %s3539_s3 = inlined_call_operand.vmem [shape: f32[32,4], index: 3, kind: input, shape index: {}]   ;;  %s3540_s4 = inlined_call_operand.vmem [shape: f32[1,4], index: 4, kind: input, shape index: {}]   ;;  %s3541_s5 = inlined_call_operand.vmem [shape: f32[1000,4], index: 5, kind: output, shape index: {}]  }
   0x1   :  { %s2810_s20 = smov 0  }
   0x2 LB: > { %s2819_s21 = sadd.s32 4294967295, %s2742_s20   ;;  %s2821_s22 = sadd.s32 1, %s2742_s20   ;;  %s2742_s20 = sphi %s2810_s20, %s3550_s20   ;;  %s2738_s19 = sphi %s2808_s19, %s3549_s19   ;;  %s2734_s18 = sphi %s2806_s18, %s3548_s18  }
   0x3   : > { %s129_s23 = ssub.s32 %s2742_s20, %s2821_s22  ;;  %s132_s24 = sadd.s32 1, %s2738_s19 }
   0x4   : > { %p130_p0 = scmp.eq.s32.totalorder %s129_s23, 0  ;;  %p142_p1 = scmp.ne.s32.totalorder %s2738_s19, %s2734_s18 }
   0x5   : > { %p143_p2 = scmp.eq.s32.totalorder %s2819_s21, 1  ;;  %p2086_p3 = scmp.ge.s32.totalorder %s2742_s20, 1 }
   0x6   : > { %s2829_s25 = scalar_select %p130_p0, %s2738_s19, %s132_s24  }
   0x7   : > { %p2831_p4 = por %p143_p2, %p142_p1  ;;  %p196_p5 = scmp.lt.s32.totalorder %s2742_s20, 3 }
   0x9   : > { %p197_p6 = pnand %p2086_p3, %p196_p5 }
   0xa   : > { %v310_v0 = vld [vmem:[%s3537_s1] sm:$0xff] (!%p197_p6)  ;;  %v311_v1 = vld [vmem:[%s3537_s1 + $0x8] sm:$0xff] (!%p197_p6)  ;;  %v312_v2 = vld [vmem:[%s3537_s1 + $0x10] sm:$0xff] (!%p197_p6)  ;;  %s2845_s8 = sshll.u32 (!%p197_p6), %s2819_s21, 6  ;;  %vm321_vm0 = vcmask (!%p197_p6), 261120   ;;  %s224_s7 = sand.u32 (!%p197_p6), 1, %s2734_s18  }
   0xb   : > { %200 = sbr.rel (%p197_p6) target bundleno = 654 (0x28e), region = 40  ;;  %v2584_v3 = vpack.c.bf16 (!%p197_p6), %v311_v1, %v310_v0  ;;  %v313_v4 = vld [vmem:[%s3537_s1 + $0x18] sm:$0xff] (!%p197_p6)  ;;  %p232_p7 = scmp.lt.s32.totalorder (!%p197_p6), %s2845_s8, 124  ;;  %v963_v18 = vld [vmem:[%s3539_s3] sm:$0xff] (!%p197_p6)  ;;  %v964_v19 = vld [vmem:[%s3539_s3 + $0x8] sm:$0xff] (!%p197_p6)  ;;  %vm1551_vm1 = vcmask (!%p197_p6), 31744  }
   0xc   : > { %v2588_v5 = vpack.c.bf16 (!%p197_p6), %v313_v4, %v312_v2  ;;  %v2592_v21 = vpack.c.bf16 (!%p197_p6), %v964_v19, %v963_v18  ;;  %v965_v54 = vld [vmem:[%s3539_s3 + $0x10] sm:$0xff] (!%p197_p6)  ;;  %v966_v55 = vld [vmem:[%s3539_s3 + $0x18] sm:$0xff] (!%p197_p6)  ;;  %s2087_s9 = sshll.u32 (!%p197_p6), %s224_s7, 9 }
   0xd   : > { %2585 = vmatprep.subr.bf16.mxu0 (!%p197_p6), %v2584_v3  ;;  %v2596_v56 = vpack.c.bf16 (!%p197_p6), %v966_v55, %v965_v54 }
   0xe   : > { %2587 = vmatpush3.bf16.msra.mxu0 (!%p197_p6), %v2584_v3  ;;  %2593 = vmatprep.subr.bf16.mxu1 (!%p197_p6), %v2592_v21 }
   0xf   : > { %2589 = vmatprep.subr.bf16.mxu0 (!%p197_p6), %v2588_v5  ;;  %2595 = vmatpush3.bf16.msra.mxu1 (!%p197_p6), %v2592_v21 }
  0x10   : > { %2597 = vmatprep.subr.bf16.mxu1 (!%p197_p6), %v2596_v56 }
  0x12   : > { %s233_s11 = scalar_select %p232_p7, %s2845_s8, 124  ;;  %2591 = vmatpush3.bf16.msra.mxu0 %v2588_v5 }
  0x13   : > { %2599 = vmatpush3.bf16.msra.mxu1 %v2596_v56  ;;  %s1624_s18 = ssub.s32 (%p2831_p4), 125, %s2845_s8  ;;  %s2237_s13 = sshll.u32 (%p2831_p4), %s2819_s21, 9 }
  0x14   : > { %s2089_s12 = sshll.u32 %s233_s11, 3  ;;  %p1625_p8 = scmp.lt.s32.totalorder (%p2831_p4), %s1624_s18, 64 }
  0x15   : > { %s2855_s15 = scalar_lea.vmem %s3536_s0, %s2089_s12  ;;  %s3138_s12 = scalar_lea.vmem [#allocation2], %s2087_s9  }
  0x16   : > { %v246_v6 = vld [vmem:[%s2855_s15] sm:$0xff]  ;;  %v247_v7 = vld [vmem:[%s2855_s15 + $0x8] sm:$0xff]  ;;  %v248_v8 = vld [vmem:[%s2855_s15 + $0x10] sm:$0xff]  ;;  %s3337_s16 = scalar_lea.vmem (%p2831_p4), %s3541_s5, %s2237_s13  }
  0x17   : > { %2384 = vmatprep.mubr.msk.f32.mxu0 %vm321_vm0, %v246_v6  ;;  %v249_v9 = vld [vmem:[%s2855_s15 + $0x18] sm:$0xff]  ;;  %v250_v10 = vld [vmem:[%s2855_s15 + $0x20] sm:$0xff]  ;;  %v251_v11 = vld [vmem:[%s2855_s15 + $0x28] sm:$0xff] }
  0x18   : > { %2385 = vmatmul.mubr.msk.f32.vlgmr.msra.gmra.mrb[0].mxu0 %vm321_vm0, %v247_v7  ;;  %v252_v12 = vld [vmem:[%s2855_s15 + $0x30] sm:$0xff]  ;;  %v253_v13 = vld [vmem:[%s2855_s15 + $0x38] sm:$0xff]  ;;  %v254_v14 = vld [vmem:[%s2855_s15 + $0x40] sm:$0xff] }
  0x19   : > { %2387 = vmatprep.mubr.msk.f32.mxu0 %vm321_vm0, %v248_v8  ;;  %v255_v15 = vld [vmem:[%s2855_s15 + $0x48] sm:$0xff]  ;;  %v256_v16 = vld [vmem:[%s2855_s15 + $0x50] sm:$0xff]  ;;  %v257_v17 = vld [vmem:[%s2855_s15 + $0x58] sm:$0xff] }
  0x1a   : > { %v258_v20 = vld [vmem:[%s2855_s15 + $0x60] sm:$0xff]  ;;  %v259_v22 = vld [vmem:[%s2855_s15 + $0x68] sm:$0xff]  ;;  %v260_v23 = vld [vmem:[%s2855_s15 + $0x70] sm:$0xff] }
  0x1b   : > { %v261_v24 = vld [vmem:[%s2855_s15 + $0x78] sm:$0xff]  ;;  %v262_v25 = vld [vmem:[%s2855_s15 + $0x80] sm:$0xff]  ;;  %v263_v26 = vld [vmem:[%s2855_s15 + $0x88] sm:$0xff] }
  0x1c   : > { %2388 = vmatmul.mubr.msk.f32.gmra.mrb[2].mxu0 %vm321_vm0, %v249_v9  ;;  %v264_v27 = vld [vmem:[%s2855_s15 + $0x90] sm:$0xff]  ;;  %v265_v28 = vld [vmem:[%s2855_s15 + $0x98] sm:$0xff]  ;;  %v266_v29 = vld [vmem:[%s2855_s15 + $0xa0] sm:$0xff] }
  0x1d   : > { %2390 = vmatprep.mubr.msk.f32.mxu0 %vm321_vm0, %v250_v10  ;;  %v267_v30 = vld [vmem:[%s2855_s15 + $0xa8] sm:$0xff]  ;;  %v268_v31 = vld [vmem:[%s2855_s15 + $0xb0] sm:$0xff]  ;;  %v269_v32 = vld [vmem:[%s2855_s15 + $0xb8] sm:$0xff] }
  0x1e   : > { %v270_v33 = vld [vmem:[%s2855_s15 + $0xc0] sm:$0xff]  ;;  %v271_v34 = vld [vmem:[%s2855_s15 + $0xc8] sm:$0xff]  ;;  %v272_v35 = vld [vmem:[%s2855_s15 + $0xd0] sm:$0xff] }
  0x1f   : > { %v273_v36 = vld [vmem:[%s2855_s15 + $0xd8] sm:$0xff]  ;;  %v274_v37 = vld [vmem:[%s2855_s15 + $0xe0] sm:$0xff]  ;;  %v275_v38 = vld [vmem:[%s2855_s15 + $0xe8] sm:$0xff] }
  0x20   : > { %2391 = vmatmul.mubr.msk.f32.gmra.mrb[4].mxu0 %vm321_vm0, %v251_v11  ;;  %v276_v39 = vld [vmem:[%s2855_s15 + $0xf0] sm:$0xff]  ;;  %v277_v40 = vld [vmem:[%s2855_s15 + $0xf8] sm:$0xff]  ;;  %v278_v41 = vld [vmem:[%s2855_s15 + $0x100] sm:$0xff] }
  0x21   : > { %2393 = vmatprep.mubr.msk.f32.mxu0 %vm321_vm0, %v252_v12  ;;  %v279_v42 = vld [vmem:[%s2855_s15 + $0x108] sm:$0xff]  ;;  %v280_v43 = vld [vmem:[%s2855_s15 + $0x110] sm:$0xff]  ;;  %v281_v44 = vld [vmem:[%s2855_s15 + $0x118] sm:$0xff] }
  0x22   : > { %v282_v45 = vld [vmem:[%s2855_s15 + $0x120] sm:$0xff]  ;;  %v283_v46 = vld [vmem:[%s2855_s15 + $0x128] sm:$0xff]  ;;  %v284_v47 = vld [vmem:[%s2855_s15 + $0x130] sm:$0xff] }
  0x23   : > { %v285_v48 = vld [vmem:[%s2855_s15 + $0x138] sm:$0xff]  ;;  %v286_v49 = vld [vmem:[%s2855_s15 + $0x140] sm:$0xff]  ;;  %v287_v50 = vld [vmem:[%s2855_s15 + $0x148] sm:$0xff] }
  0x24   : > { %2394 = vmatmul.mubr.msk.f32.gmra.mrb[6].mxu0 %vm321_vm0, %v253_v13  ;;  %v288_v51 = vld [vmem:[%s2855_s15 + $0x150] sm:$0xff]  ;;  %v289_v52 = vld [vmem:[%s2855_s15 + $0x158] sm:$0xff]  ;;  %v290_v53 = vld [vmem:[%s2855_s15 + $0x160] sm:$0xff] }
  0x25   : > { %2396 = vmatprep.mubr.msk.f32.mxu0 %vm321_vm0, %v254_v14  ;;  %v291_v57 = vld [vmem:[%s2855_s15 + $0x168] sm:$0xff]  ;;  %v292_v58 = vld [vmem:[%s2855_s15 + $0x170] sm:$0xff]  ;;  %v293_v59 = vld [vmem:[%s2855_s15 + $0x178] sm:$0xff] }
  0x26   : > { %v294_v60 = vld [vmem:[%s2855_s15 + $0x180] sm:$0xff]  ;;  %v295_v61 = vld [vmem:[%s2855_s15 + $0x188] sm:$0xff]  ;;  %v296_v62 = vld [vmem:[%s2855_s15 + $0x190] sm:$0xff] }
  0x27   : > { %v297_v63 = vld [vmem:[%s2855_s15 + $0x198] sm:$0xff]  ;;  %v298_v0 = vld [vmem:[%s2855_s15 + $0x1a0] sm:$0xff]  ;;  %v299_v1 = vld [vmem:[%s2855_s15 + $0x1a8] sm:$0xff] }
  0x28   : > { %2397 = vmatmul.mubr.msk.f32.gmra.mrb[8].mxu0 %vm321_vm0, %v255_v15  ;;  %v300_v2 = vld [vmem:[%s2855_s15 + $0x1b0] sm:$0xff]  ;;  %v301_v3 = vld [vmem:[%s2855_s15 + $0x1b8] sm:$0xff]  ;;  %v302_v4 = vld [vmem:[%s2855_s15 + $0x1c0] sm:$0xff] }
  0x29   : > { %2399 = vmatprep.mubr.msk.f32.mxu0 %vm321_vm0, %v256_v16  ;;  %v303_v5 = vld [vmem:[%s2855_s15 + $0x1c8] sm:$0xff]  ;;  %v304_v6 = vld [vmem:[%s2855_s15 + $0x1d0] sm:$0xff]  ;;  %v305_v7 = vld [vmem:[%s2855_s15 + $0x1d8] sm:$0xff] }
  0x2a   : > { %v306_v8 = vld [vmem:[%s2855_s15 + $0x1e0] sm:$0xff]  ;;  %v307_v9 = vld [vmem:[%s2855_s15 + $0x1e8] sm:$0xff]  ;;  %v308_v10 = vld [vmem:[%s2855_s15 + $0x1f0] sm:$0xff] }
  0x2b   : > { %v309_v11 = vld [vmem:[%s2855_s15 + $0x1f8] sm:$0xff]  ;;  %v3000_v12 = vld [vmem:[%s3538_s2] ss:$0 sm:$0xff] }
  0x2c   : > { %2400 = vmatmul.mubr.msk.f32.gmra.mrb[10].mxu0 %vm321_vm0, %v257_v17 }
  0x2d   : > { %2402 = vmatprep.mubr.msk.f32.mxu0 %vm321_vm0, %v258_v20 }
  0x30   : > { %2403 = vmatmul.mubr.msk.f32.gmra.mrb[12].mxu0 %vm321_vm0, %v259_v22 }
  0x31   : > { %2405 = vmatprep.mubr.msk.f32.mxu0 %vm321_vm0, %v260_v23 }
  0x34   : > { %2406 = vmatmul.mubr.msk.f32.gmra.mrb[14].mxu0 %vm321_vm0, %v261_v24 }
  0x35   : > { %2408 = vmatprep.mubr.msk.f32.mxu0 %vm321_vm0, %v262_v25 }
  0x38   : > { %2409 = vmatmul.mubr.msk.f32.gmra.mrb[16].mxu0 %vm321_vm0, %v263_v26 }
  0x39   : > { %2411 = vmatprep.mubr.msk.f32.mxu0 %vm321_vm0, %v264_v27 }
  0x3c   : > { %2412 = vmatmul.mubr.msk.f32.gmra.mrb[18].mxu0 %vm321_vm0, %v265_v28 }
  0x3d   : > { %2414 = vmatprep.mubr.msk.f32.mxu0 %vm321_vm0, %v266_v29 }
  0x40   : > { %2415 = vmatmul.mubr.msk.f32.gmra.mrb[20].mxu0 %vm321_vm0, %v267_v30 }
  0x41   : > { %2417 = vmatprep.mubr.msk.f32.mxu0 %vm321_vm0, %v268_v31 }
  0x44   : > { %2418 = vmatmul.mubr.msk.f32.gmra.mrb[22].mxu0 %vm321_vm0, %v269_v32 }
  0x45   : > { %2420 = vmatprep.mubr.msk.f32.mxu0 %vm321_vm0, %v270_v33 }
  0x48   : > { %2421 = vmatmul.mubr.msk.f32.gmra.mrb[24].mxu0 %vm321_vm0, %v271_v34 }
  0x49   : > { %2423 = vmatprep.mubr.msk.f32.mxu0 %vm321_vm0, %v272_v35 }
  0x4c   : > { %2424 = vmatmul.mubr.msk.f32.gmra.mrb[26].mxu0 %vm321_vm0, %v273_v36 }
  0x4d   : > { %2426 = vmatprep.mubr.msk.f32.mxu0 %vm321_vm0, %v274_v37 }
  0x50   : > { %2427 = vmatmul.mubr.msk.f32.gmra.mrb[28].mxu0 %vm321_vm0, %v275_v38 }
  0x51   : > { %2429 = vmatprep.mubr.msk.f32.mxu0 %vm321_vm0, %v276_v39 }
  0x54   : > { %2430 = vmatmul.mubr.msk.f32.gmra.mrb[30].mxu0 %vm321_vm0, %v277_v40 }
  0x55   : > { %2432 = vmatprep.mubr.msk.f32.mxu0 %vm321_vm0, %v278_v41 }
  0x58   : > { %2433 = vmatmul.mubr.msk.f32.gmra.mrb[32].mxu0 %vm321_vm0, %v279_v42 }
  0x59   : > { %2435 = vmatprep.mubr.msk.f32.mxu0 %vm321_vm0, %v280_v43 }
  0x5c   : > { %2436 = vmatmul.mubr.msk.f32.gmra.mrb[34].mxu0 %vm321_vm0, %v281_v44 }
  0x5d   : > { %2438 = vmatprep.mubr.msk.f32.mxu0 %vm321_vm0, %v282_v45 }
  0x60   : > { %2439 = vmatmul.mubr.msk.f32.gmra.mrb[36].mxu0 %vm321_vm0, %v283_v46 }
  0x61   : > { %2441 = vmatprep.mubr.msk.f32.mxu0 %vm321_vm0, %v284_v47 }
  0x64   : > { %2442 = vmatmul.mubr.msk.f32.gmra.mrb[38].mxu0 %vm321_vm0, %v285_v48 }
  0x65   : > { %2444 = vmatprep.mubr.msk.f32.mxu0 %vm321_vm0, %v286_v49 }
  0x68   : > { %2445 = vmatmul.mubr.msk.f32.gmra.mrb[40].mxu0 %vm321_vm0, %v287_v50 }
  0x69   : > { %2447 = vmatprep.mubr.msk.f32.mxu0 %vm321_vm0, %v288_v51 }
  0x6c   : > { %2448 = vmatmul.mubr.msk.f32.gmra.mrb[42].mxu0 %vm321_vm0, %v289_v52 }
  0x6d   : > { %2450 = vmatprep.mubr.msk.f32.mxu0 %vm321_vm0, %v290_v53 }
  0x70   : > { %2451 = vmatmul.mubr.msk.f32.gmra.mrb[44].mxu0 %vm321_vm0, %v291_v57 }
  0x71   : > { %2453 = vmatprep.mubr.msk.f32.mxu0 %vm321_vm0, %v292_v58 }
  0x74   : > { %2454 = vmatmul.mubr.msk.f32.gmra.mrb[46].mxu0 %vm321_vm0, %v293_v59 }
  0x75   : > { %2456 = vmatprep.mubr.msk.f32.mxu0 %vm321_vm0, %v294_v60 }
  0x78   : > { %2457 = vmatmul.mubr.msk.f32.gmra.mrb[48].mxu0 %vm321_vm0, %v295_v61 }
  0x79   : > { %2459 = vmatprep.mubr.msk.f32.mxu0 %vm321_vm0, %v296_v62 }
  0x7c   : > { %2460 = vmatmul.mubr.msk.f32.gmra.mrb[50].mxu0 %vm321_vm0, %v297_v63 }
  0x7d   : > { %2462 = vmatprep.mubr.msk.f32.mxu0 %vm321_vm0, %v298_v0 }
  0x80   : > { %2463 = vmatmul.mubr.msk.f32.gmra.mrb[52].mxu0 %vm321_vm0, %v299_v1 }
  0x81   : > { %2465 = vmatprep.mubr.msk.f32.mxu0 %vm321_vm0, %v300_v2 }
  0x84   : > { %2466 = vmatmul.mubr.msk.f32.gmra.mrb[54].mxu0 %vm321_vm0, %v301_v3 }
  0x85   : > { %2468 = vmatprep.mubr.msk.f32.mxu0 %vm321_vm0, %v302_v4 }
  0x88   : > { %2469 = vmatmul.mubr.msk.f32.gmra.mrb[56].mxu0 %vm321_vm0, %v303_v5 }
  0x89   : > { %2471 = vmatprep.mubr.msk.f32.mxu0 %vm321_vm0, %v304_v6 }
  0x8c   : > { %2472 = vmatmul.mubr.msk.f32.gmra.mrb[58].mxu0 %vm321_vm0, %v305_v7 }
  0x8d   : > { %2474 = vmatprep.mubr.msk.f32.mxu0 %vm321_vm0, %v306_v8 }
  0x90   : > { %2475 = vmatmul.mubr.msk.f32.gmra.mrb[60].mxu0 %vm321_vm0, %v307_v9 }
  0x91   : > { %2477 = vmatprep.mubr.msk.f32.mxu0 %vm321_vm0, %v308_v10 }
  0x94   : > { %2478 = vmatmul.mubr.msk.f32.gmra.mrb[62].mxu0 %vm321_vm0, %v309_v11 }
  0xeb   : > { %v2386_v13 = vpop.f32.mrb[0].mxu0 }
  0xec   : > { %v586_v14 = vadd.f32 %v2386_v13, %v3000_v12  ;;  %v580_v15 = vpop.f32.mrb[1].mxu0 }
  0xed   : > { %v581_v16 = vadd.f32 %v3000_v12, %v580_v15 }
  0xee   : > { %v900_v19 = vmax.f32 %v586_v14, 0.0 }
  0xef   : > { %v899_v17 = vmax.f32 %v581_v16, 0.0  ;;  %v2389_v18 = vpop.f32.mrb[2].mxu0 }
  0xf0   : > { %v596_v20 = vadd.f32 %v2389_v18, %v3000_v12  ;;  %v590_v21 = vpop.f32.mrb[3].mxu0 }
  0xf1   : > { %v591_v22 = vadd.f32 %v3000_v12, %v590_v21  ;;  %2488 = vmatprep.mubr.msk.f32.mxu1 %vm321_vm0, %v899_v17 }
  0xf2   : > { %2489 = vmatmul.mubr.msk.f32.vlgmr.msra.gmra.mrb[0].mxu1 %vm321_vm0, %v900_v19  ;;  %v902_v25 = vmax.f32 %v596_v20, 0.0 }
  0xf3   : > { %v901_v23 = vmax.f32 %v591_v22, 0.0  ;;  %v2392_v24 = vpop.f32.mrb[4].mxu0 }
  0xf4   : > { %v606_v26 = vadd.f32 %v2392_v24, %v3000_v12  ;;  %v600_v27 = vpop.f32.mrb[5].mxu0 }
  0xf5   : > { %v601_v28 = vadd.f32 %v3000_v12, %v600_v27  ;;  %2491 = vmatprep.mubr.msk.f32.mxu1 %vm321_vm0, %v901_v23 }
  0xf6   : > { %2492 = vmatmul.mubr.msk.f32.gmra.mrb[2].mxu1 %vm321_vm0, %v902_v25  ;;  %v904_v31 = vmax.f32 %v606_v26, 0.0 }
  0xf7   : > { %v903_v29 = vmax.f32 %v601_v28, 0.0  ;;  %v2395_v30 = vpop.f32.mrb[6].mxu0 }
  0xf8   : > { %v616_v32 = vadd.f32 %v2395_v30, %v3000_v12  ;;  %v610_v33 = vpop.f32.mrb[7].mxu0 }
  0xf9   : > { %v611_v34 = vadd.f32 %v3000_v12, %v610_v33  ;;  %2494 = vmatprep.mubr.msk.f32.mxu1 %vm321_vm0, %v903_v29 }
  0xfa   : > { %2495 = vmatmul.mubr.msk.f32.gmra.mrb[4].mxu1 %vm321_vm0, %v904_v31  ;;  %v906_v37 = vmax.f32 %v616_v32, 0.0 }
  0xfb   : > { %v905_v35 = vmax.f32 %v611_v34, 0.0  ;;  %v2398_v36 = vpop.f32.mrb[8].mxu0 }
  0xfc   : > { %v626_v38 = vadd.f32 %v2398_v36, %v3000_v12  ;;  %v620_v39 = vpop.f32.mrb[9].mxu0 }
  0xfd   : > { %v621_v40 = vadd.f32 %v3000_v12, %v620_v39  ;;  %2497 = vmatprep.mubr.msk.f32.mxu1 %vm321_vm0, %v905_v35 }
  0xfe   : > { %2498 = vmatmul.mubr.msk.f32.gmra.mrb[6].mxu1 %vm321_vm0, %v906_v37  ;;  %v908_v43 = vmax.f32 %v626_v38, 0.0 }
  0xff   : > { %v907_v41 = vmax.f32 %v621_v40, 0.0  ;;  %v2401_v42 = vpop.f32.mrb[10].mxu0 }
 0x100   : > { %v636_v44 = vadd.f32 %v2401_v42, %v3000_v12  ;;  %v630_v45 = vpop.f32.mrb[11].mxu0 }
 0x101   : > { %v631_v46 = vadd.f32 %v3000_v12, %v630_v45  ;;  %2500 = vmatprep.mubr.msk.f32.mxu1 %vm321_vm0, %v907_v41 }
 0x102   : > { %2501 = vmatmul.mubr.msk.f32.gmra.mrb[8].mxu1 %vm321_vm0, %v908_v43  ;;  %v910_v49 = vmax.f32 %v636_v44, 0.0 }
 0x103   : > { %v909_v47 = vmax.f32 %v631_v46, 0.0  ;;  %v2404_v48 = vpop.f32.mrb[12].mxu0 }
 0x104   : > { %v646_v50 = vadd.f32 %v2404_v48, %v3000_v12  ;;  %v640_v51 = vpop.f32.mrb[13].mxu0 }
 0x105   : > { %v641_v52 = vadd.f32 %v3000_v12, %v640_v51  ;;  %2503 = vmatprep.mubr.msk.f32.mxu1 %vm321_vm0, %v909_v47 }
 0x106   : > { %2504 = vmatmul.mubr.msk.f32.gmra.mrb[10].mxu1 %vm321_vm0, %v910_v49  ;;  %v912_v55 = vmax.f32 %v646_v50, 0.0 }
 0x107   : > { %v911_v53 = vmax.f32 %v641_v52, 0.0  ;;  %v2407_v54 = vpop.f32.mrb[14].mxu0 }
 0x108   : > { %v656_v56 = vadd.f32 %v2407_v54, %v3000_v12  ;;  %v650_v57 = vpop.f32.mrb[15].mxu0 }
 0x109   : > { %v651_v58 = vadd.f32 %v3000_v12, %v650_v57  ;;  %2506 = vmatprep.mubr.msk.f32.mxu1 %vm321_vm0, %v911_v53 }
 0x10a   : > { %2507 = vmatmul.mubr.msk.f32.gmra.mrb[12].mxu1 %vm321_vm0, %v912_v55  ;;  %v914_v61 = vmax.f32 %v656_v56, 0.0 }
 0x10b   : > { %v913_v59 = vmax.f32 %v651_v58, 0.0  ;;  %v2410_v60 = vpop.f32.mrb[16].mxu0 }
 0x10c   : > { %v666_v62 = vadd.f32 %v2410_v60, %v3000_v12  ;;  %v660_v63 = vpop.f32.mrb[17].mxu0 }
 0x10d   : > { %v661_v0 = vadd.f32 %v3000_v12, %v660_v63  ;;  %2509 = vmatprep.mubr.msk.f32.mxu1 %vm321_vm0, %v913_v59 }
 0x10e   : > { %2510 = vmatmul.mubr.msk.f32.gmra.mrb[14].mxu1 %vm321_vm0, %v914_v61  ;;  %v916_v3 = vmax.f32 %v666_v62, 0.0 }
 0x10f   : > { %v915_v1 = vmax.f32 %v661_v0, 0.0  ;;  %v2413_v2 = vpop.f32.mrb[18].mxu0 }
 0x110   : > { %v676_v4 = vadd.f32 %v2413_v2, %v3000_v12  ;;  %v670_v5 = vpop.f32.mrb[19].mxu0 }
 0x111   : > { %v671_v6 = vadd.f32 %v3000_v12, %v670_v5  ;;  %2512 = vmatprep.mubr.msk.f32.mxu1 %vm321_vm0, %v915_v1 }
 0x112   : > { %2513 = vmatmul.mubr.msk.f32.gmra.mrb[16].mxu1 %vm321_vm0, %v916_v3  ;;  %v918_v9 = vmax.f32 %v676_v4, 0.0 }
 0x113   : > { %v917_v7 = vmax.f32 %v671_v6, 0.0  ;;  %v2416_v8 = vpop.f32.mrb[20].mxu0 }
 0x114   : > { %v686_v10 = vadd.f32 %v2416_v8, %v3000_v12  ;;  %v680_v11 = vpop.f32.mrb[21].mxu0 }
 0x115   : > { %v681_v13 = vadd.f32 %v3000_v12, %v680_v11  ;;  %2515 = vmatprep.mubr.msk.f32.mxu1 %vm321_vm0, %v917_v7 }
 0x116   : > { %2516 = vmatmul.mubr.msk.f32.gmra.mrb[18].mxu1 %vm321_vm0, %v918_v9  ;;  %v920_v16 = vmax.f32 %v686_v10, 0.0 }
 0x117   : > { %v919_v14 = vmax.f32 %v681_v13, 0.0  ;;  %v2419_v15 = vpop.f32.mrb[22].mxu0 }
 0x118   : > { %v696_v17 = vadd.f32 %v2419_v15, %v3000_v12  ;;  %v690_v18 = vpop.f32.mrb[23].mxu0 }
 0x119   : > { %v691_v19 = vadd.f32 %v3000_v12, %v690_v18  ;;  %2518 = vmatprep.mubr.msk.f32.mxu1 %vm321_vm0, %v919_v14 }
 0x11a   : > { %2519 = vmatmul.mubr.msk.f32.gmra.mrb[20].mxu1 %vm321_vm0, %v920_v16  ;;  %v922_v22 = vmax.f32 %v696_v17, 0.0 }
 0x11b   : > { %v921_v20 = vmax.f32 %v691_v19, 0.0  ;;  %v2422_v21 = vpop.f32.mrb[24].mxu0 }
 0x11c   : > { %v706_v23 = vadd.f32 %v2422_v21, %v3000_v12  ;;  %v700_v24 = vpop.f32.mrb[25].mxu0 }
 0x11d   : > { %v701_v25 = vadd.f32 %v3000_v12, %v700_v24  ;;  %2521 = vmatprep.mubr.msk.f32.mxu1 %vm321_vm0, %v921_v20 }
 0x11e   : > { %2522 = vmatmul.mubr.msk.f32.gmra.mrb[22].mxu1 %vm321_vm0, %v922_v22  ;;  %v924_v28 = vmax.f32 %v706_v23, 0.0 }
 0x11f   : > { %v923_v26 = vmax.f32 %v701_v25, 0.0  ;;  %v2425_v27 = vpop.f32.mrb[26].mxu0 }
 0x120   : > { %v716_v29 = vadd.f32 %v2425_v27, %v3000_v12  ;;  %v710_v30 = vpop.f32.mrb[27].mxu0 }
 0x121   : > { %v711_v31 = vadd.f32 %v3000_v12, %v710_v30  ;;  %2524 = vmatprep.mubr.msk.f32.mxu1 %vm321_vm0, %v923_v26 }
 0x122   : > { %2525 = vmatmul.mubr.msk.f32.gmra.mrb[24].mxu1 %vm321_vm0, %v924_v28  ;;  %v926_v34 = vmax.f32 %v716_v29, 0.0 }
 0x123   : > { %v925_v32 = vmax.f32 %v711_v31, 0.0  ;;  %v2428_v33 = vpop.f32.mrb[28].mxu0 }
 0x124   : > { %v726_v35 = vadd.f32 %v2428_v33, %v3000_v12  ;;  %v720_v36 = vpop.f32.mrb[29].mxu0 }
 0x125   : > { %v721_v37 = vadd.f32 %v3000_v12, %v720_v36  ;;  %2527 = vmatprep.mubr.msk.f32.mxu1 %vm321_vm0, %v925_v32 }
 0x126   : > { %2528 = vmatmul.mubr.msk.f32.gmra.mrb[26].mxu1 %vm321_vm0, %v926_v34  ;;  %v928_v40 = vmax.f32 %v726_v35, 0.0 }
 0x127   : > { %v927_v38 = vmax.f32 %v721_v37, 0.0  ;;  %v2431_v39 = vpop.f32.mrb[30].mxu0 }
 0x128   : > { %v736_v41 = vadd.f32 %v2431_v39, %v3000_v12  ;;  %v730_v42 = vpop.f32.mrb[31].mxu0 }
 0x129   : > { %v731_v43 = vadd.f32 %v3000_v12, %v730_v42  ;;  %2530 = vmatprep.mubr.msk.f32.mxu1 %vm321_vm0, %v927_v38 }
 0x12a   : > { %2531 = vmatmul.mubr.msk.f32.gmra.mrb[28].mxu1 %vm321_vm0, %v928_v40  ;;  %v930_v46 = vmax.f32 %v736_v41, 0.0 }
 0x12b   : > { %v929_v44 = vmax.f32 %v731_v43, 0.0  ;;  %v2434_v45 = vpop.f32.mrb[32].mxu0 }
 0x12c   : > { %v746_v47 = vadd.f32 %v2434_v45, %v3000_v12  ;;  %v740_v48 = vpop.f32.mrb[33].mxu0 }
 0x12d   : > { %v741_v49 = vadd.f32 %v3000_v12, %v740_v48  ;;  %2533 = vmatprep.mubr.msk.f32.mxu1 %vm321_vm0, %v929_v44 }
 0x12e   : > { %2534 = vmatmul.mubr.msk.f32.gmra.mrb[30].mxu1 %vm321_vm0, %v930_v46  ;;  %v932_v52 = vmax.f32 %v746_v47, 0.0 }
 0x12f   : > { %v931_v50 = vmax.f32 %v741_v49, 0.0  ;;  %v2437_v51 = vpop.f32.mrb[34].mxu0 }
 0x130   : > { %v756_v53 = vadd.f32 %v2437_v51, %v3000_v12  ;;  %v750_v54 = vpop.f32.mrb[35].mxu0 }
 0x131   : > { %v751_v55 = vadd.f32 %v3000_v12, %v750_v54  ;;  %2536 = vmatprep.mubr.msk.f32.mxu1 %vm321_vm0, %v931_v50 }
 0x132   : > { %2537 = vmatmul.mubr.msk.f32.gmra.mrb[32].mxu1 %vm321_vm0, %v932_v52  ;;  %v934_v58 = vmax.f32 %v756_v53, 0.0 }
 0x133   : > { %v933_v56 = vmax.f32 %v751_v55, 0.0  ;;  %v2440_v57 = vpop.f32.mrb[36].mxu0 }
 0x134   : > { %v766_v59 = vadd.f32 %v2440_v57, %v3000_v12  ;;  %v760_v60 = vpop.f32.mrb[37].mxu0 }
 0x135   : > { %v761_v61 = vadd.f32 %v3000_v12, %v760_v60  ;;  %2539 = vmatprep.mubr.msk.f32.mxu1 %vm321_vm0, %v933_v56 }
 0x136   : > { %2540 = vmatmul.mubr.msk.f32.gmra.mrb[34].mxu1 %vm321_vm0, %v934_v58  ;;  %v936_v0 = vmax.f32 %v766_v59, 0.0 }
 0x137   : > { %v935_v62 = vmax.f32 %v761_v61, 0.0  ;;  %v2443_v63 = vpop.f32.mrb[38].mxu0 }
 0x138   : > { %v776_v1 = vadd.f32 %v2443_v63, %v3000_v12  ;;  %v770_v2 = vpop.f32.mrb[39].mxu0 }
 0x139   : > { %v771_v3 = vadd.f32 %v3000_v12, %v770_v2  ;;  %2542 = vmatprep.mubr.msk.f32.mxu1 %vm321_vm0, %v935_v62 }
 0x13a   : > { %2543 = vmatmul.mubr.msk.f32.gmra.mrb[36].mxu1 %vm321_vm0, %v936_v0  ;;  %v938_v6 = vmax.f32 %v776_v1, 0.0 }
 0x13b   : > { %v937_v4 = vmax.f32 %v771_v3, 0.0  ;;  %v2446_v5 = vpop.f32.mrb[40].mxu0 }
 0x13c   : > { %v786_v7 = vadd.f32 %v2446_v5, %v3000_v12  ;;  %v780_v8 = vpop.f32.mrb[41].mxu0 }
 0x13d   : > { %v781_v9 = vadd.f32 %v3000_v12, %v780_v8  ;;  %2545 = vmatprep.mubr.msk.f32.mxu1 %vm321_vm0, %v937_v4 }
 0x13e   : > { %2546 = vmatmul.mubr.msk.f32.gmra.mrb[38].mxu1 %vm321_vm0, %v938_v6  ;;  %v940_v13 = vmax.f32 %v786_v7, 0.0 }
 0x13f   : > { %v939_v10 = vmax.f32 %v781_v9, 0.0  ;;  %v2449_v11 = vpop.f32.mrb[42].mxu0 }
 0x140   : > { %v796_v14 = vadd.f32 %v2449_v11, %v3000_v12  ;;  %v790_v15 = vpop.f32.mrb[43].mxu0 }
 0x141   : > { %v791_v16 = vadd.f32 %v3000_v12, %v790_v15  ;;  %2548 = vmatprep.mubr.msk.f32.mxu1 %vm321_vm0, %v939_v10 }
 0x142   : > { %2549 = vmatmul.mubr.msk.f32.gmra.mrb[40].mxu1 %vm321_vm0, %v940_v13  ;;  %v942_v19 = vmax.f32 %v796_v14, 0.0 }
 0x143   : > { %v941_v17 = vmax.f32 %v791_v16, 0.0  ;;  %v2452_v18 = vpop.f32.mrb[44].mxu0  ;;  %v3134_v16 = vld [vmem:[%s3540_s4] ss:$0 sm:$0xff] }
 0x144   : > { %v806_v20 = vadd.f32 %v2452_v18, %v3000_v12  ;;  %v800_v21 = vpop.f32.mrb[45].mxu0 }
 0x145   : > { %v801_v22 = vadd.f32 %v3000_v12, %v800_v21  ;;  %2551 = vmatprep.mubr.msk.f32.mxu1 %vm321_vm0, %v941_v17 }
 0x146   : > { %2552 = vmatmul.mubr.msk.f32.gmra.mrb[42].mxu1 %vm321_vm0, %v942_v19  ;;  %v944_v25 = vmax.f32 %v806_v20, 0.0 }
 0x147   : > { %v943_v23 = vmax.f32 %v801_v22, 0.0  ;;  %v2455_v24 = vpop.f32.mrb[46].mxu0 }
 0x148   : > { %v816_v26 = vadd.f32 %v2455_v24, %v3000_v12  ;;  %v810_v27 = vpop.f32.mrb[47].mxu0 }
 0x149   : > { %v811_v28 = vadd.f32 %v3000_v12, %v810_v27  ;;  %2554 = vmatprep.mubr.msk.f32.mxu1 %vm321_vm0, %v943_v23 }
 0x14a   : > { %2555 = vmatmul.mubr.msk.f32.gmra.mrb[44].mxu1 %vm321_vm0, %v944_v25  ;;  %v946_v31 = vmax.f32 %v816_v26, 0.0 }
 0x14b   : > { %v945_v29 = vmax.f32 %v811_v28, 0.0  ;;  %v2458_v30 = vpop.f32.mrb[48].mxu0 }
 0x14c   : > { %v826_v32 = vadd.f32 %v2458_v30, %v3000_v12  ;;  %v820_v33 = vpop.f32.mrb[49].mxu0 }
 0x14d   : > { %v821_v34 = vadd.f32 %v3000_v12, %v820_v33  ;;  %2557 = vmatprep.mubr.msk.f32.mxu1 %vm321_vm0, %v945_v29 }
 0x14e   : > { %2558 = vmatmul.mubr.msk.f32.gmra.mrb[46].mxu1 %vm321_vm0, %v946_v31  ;;  %v948_v37 = vmax.f32 %v826_v32, 0.0 }
 0x14f   : > { %v947_v35 = vmax.f32 %v821_v34, 0.0  ;;  %v2461_v36 = vpop.f32.mrb[50].mxu0 }
 0x150   : > { %v836_v38 = vadd.f32 %v2461_v36, %v3000_v12  ;;  %v830_v39 = vpop.f32.mrb[51].mxu0 }
 0x151   : > { %v831_v40 = vadd.f32 %v3000_v12, %v830_v39  ;;  %2560 = vmatprep.mubr.msk.f32.mxu1 %vm321_vm0, %v947_v35 }
 0x152   : > { %2561 = vmatmul.mubr.msk.f32.gmra.mrb[48].mxu1 %vm321_vm0, %v948_v37  ;;  %v950_v43 = vmax.f32 %v836_v38, 0.0 }
 0x153   : > { %v949_v41 = vmax.f32 %v831_v40, 0.0  ;;  %v2464_v42 = vpop.f32.mrb[52].mxu0 }
 0x154   : > { %v846_v44 = vadd.f32 %v2464_v42, %v3000_v12  ;;  %v840_v45 = vpop.f32.mrb[53].mxu0 }
 0x155   : > { %v841_v46 = vadd.f32 %v3000_v12, %v840_v45  ;;  %2563 = vmatprep.mubr.msk.f32.mxu1 %vm321_vm0, %v949_v41 }
 0x156   : > { %2564 = vmatmul.mubr.msk.f32.gmra.mrb[50].mxu1 %vm321_vm0, %v950_v43  ;;  %v952_v49 = vmax.f32 %v846_v44, 0.0 }
 0x157   : > { %v951_v47 = vmax.f32 %v841_v46, 0.0  ;;  %v2467_v48 = vpop.f32.mrb[54].mxu0 }
 0x158   : > { %v856_v50 = vadd.f32 %v2467_v48, %v3000_v12  ;;  %v850_v51 = vpop.f32.mrb[55].mxu0 }
 0x159   : > { %v851_v52 = vadd.f32 %v3000_v12, %v850_v51  ;;  %2566 = vmatprep.mubr.msk.f32.mxu1 %vm321_vm0, %v951_v47 }
 0x15a   : > { %2567 = vmatmul.mubr.msk.f32.gmra.mrb[52].mxu1 %vm321_vm0, %v952_v49  ;;  %v954_v55 = vmax.f32 %v856_v50, 0.0 }
 0x15b   : > { %v953_v53 = vmax.f32 %v851_v52, 0.0  ;;  %v2470_v54 = vpop.f32.mrb[56].mxu0 }
 0x15c   : > { %v866_v56 = vadd.f32 %v2470_v54, %v3000_v12  ;;  %v860_v57 = vpop.f32.mrb[57].mxu0 }
 0x15d   : > { %v861_v58 = vadd.f32 %v3000_v12, %v860_v57  ;;  %2569 = vmatprep.mubr.msk.f32.mxu1 %vm321_vm0, %v953_v53 }
 0x15e   : > { %2570 = vmatmul.mubr.msk.f32.gmra.mrb[54].mxu1 %vm321_vm0, %v954_v55  ;;  %v956_v61 = vmax.f32 %v866_v56, 0.0 }
 0x15f   : > { %v955_v59 = vmax.f32 %v861_v58, 0.0  ;;  %v2473_v60 = vpop.f32.mrb[58].mxu0 }
 0x160   : > { %v876_v62 = vadd.f32 %v2473_v60, %v3000_v12  ;;  %v870_v63 = vpop.f32.mrb[59].mxu0 }
 0x161   : > { %v871_v0 = vadd.f32 %v3000_v12, %v870_v63  ;;  %2572 = vmatprep.mubr.msk.f32.mxu1 %vm321_vm0, %v955_v59 }
 0x162   : > { %2573 = vmatmul.mubr.msk.f32.gmra.mrb[56].mxu1 %vm321_vm0, %v956_v61  ;;  %v958_v3 = vmax.f32 %v876_v62, 0.0 }
 0x163   : > { %v957_v1 = vmax.f32 %v871_v0, 0.0  ;;  %v2476_v2 = vpop.f32.mrb[60].mxu0 }
 0x164   : > { %v886_v4 = vadd.f32 %v2476_v2, %v3000_v12  ;;  %v880_v5 = vpop.f32.mrb[61].mxu0 }
 0x165   : > { %v881_v6 = vadd.f32 %v3000_v12, %v880_v5  ;;  %2575 = vmatprep.mubr.msk.f32.mxu1 %vm321_vm0, %v957_v1 }
 0x166   : > { %2576 = vmatmul.mubr.msk.f32.gmra.mrb[58].mxu1 %vm321_vm0, %v958_v3  ;;  %v960_v9 = vmax.f32 %v886_v4, 0.0 }
 0x167   : > { %v959_v7 = vmax.f32 %v881_v6, 0.0  ;;  %v2479_v8 = vpop.f32.mrb[62].mxu0 }
 0x168   : > { %v896_v10 = vadd.f32 %v2479_v8, %v3000_v12  ;;  %v890_v11 = vpop.f32.mrb[63].mxu0 }
 0x169   : > { %v891_v13 = vadd.f32 %v3000_v12, %v890_v11  ;;  %2578 = vmatprep.mubr.msk.f32.mxu1 %vm321_vm0, %v959_v7 }
 0x16a   : > { %2579 = vmatmul.mubr.msk.f32.gmra.mrb[60].mxu1 %vm321_vm0, %v960_v9  ;;  %v962_v15 = vmax.f32 %v896_v10, 0.0 }
 0x16b   : > { %v961_v14 = vmax.f32 %v891_v13, 0.0 }
 0x16d   : > { %2581 = vmatprep.mubr.msk.f32.mxu1 %vm321_vm0, %v961_v14 }
 0x16e   : > { %2582 = vmatmul.mubr.msk.f32.gmra.mrb[62].mxu1 %vm321_vm0, %v962_v15 }
 0x1c5   : > { %v2490_v17 = vpop.f32.mrb[0].mxu1 }
 0x1c6   : > { %v1238_v12 = vadd.f32 %v2490_v17, %v3134_v16  ;;  %v1232_v18 = vpop.f32.mrb[1].mxu1 }
 0x1c7   : > { %v1233_v19 = vadd.f32 %v3134_v16, %v1232_v18 }
 0x1c8   : > { %1553 = vst.msk [vmem:[%s3138_s12 + $0x8] sm:$0xff] %vm1551_vm1, %v1238_v12 }
 0x1c9   : > { %1552 = vst.msk [vmem:[%s3138_s12] sm:$0xff] %vm1551_vm1, %v1233_v19  ;;  %v2493_v20 = vpop.f32.mrb[2].mxu1 }
 0x1ca   : > { %v1248_v21 = vadd.f32 %v2493_v20, %v3134_v16  ;;  %v1242_v22 = vpop.f32.mrb[3].mxu1 }
 0x1cb   : > { %v1243_v23 = vadd.f32 %v3134_v16, %v1242_v22 }
 0x1cc   : > { %1555 = vst.msk [vmem:[%s3138_s12 + $0x18] sm:$0xff] %vm1551_vm1, %v1248_v21 }
 0x1cd   : > { %1554 = vst.msk [vmem:[%s3138_s12 + $0x10] sm:$0xff] %vm1551_vm1, %v1243_v23  ;;  %v2496_v24 = vpop.f32.mrb[4].mxu1 }
 0x1ce   : > { %v1258_v25 = vadd.f32 %v2496_v24, %v3134_v16  ;;  %v1252_v26 = vpop.f32.mrb[5].mxu1 }
 0x1cf   : > { %v1253_v27 = vadd.f32 %v3134_v16, %v1252_v26 }
 0x1d0   : > { %1557 = vst.msk [vmem:[%s3138_s12 + $0x28] sm:$0xff] %vm1551_vm1, %v1258_v25 }
 0x1d1   : > { %1556 = vst.msk [vmem:[%s3138_s12 + $0x20] sm:$0xff] %vm1551_vm1, %v1253_v27  ;;  %v2499_v28 = vpop.f32.mrb[6].mxu1 }
 0x1d2   : > { %v1268_v29 = vadd.f32 %v2499_v28, %v3134_v16  ;;  %v1262_v30 = vpop.f32.mrb[7].mxu1 }
 0x1d3   : > { %v1263_v31 = vadd.f32 %v3134_v16, %v1262_v30 }
 0x1d4   : > { %1559 = vst.msk [vmem:[%s3138_s12 + $0x38] sm:$0xff] %vm1551_vm1, %v1268_v29 }
 0x1d5   : > { %1558 = vst.msk [vmem:[%s3138_s12 + $0x30] sm:$0xff] %vm1551_vm1, %v1263_v31  ;;  %v2502_v32 = vpop.f32.mrb[8].mxu1 }
 0x1d6   : > { %v1278_v33 = vadd.f32 %v2502_v32, %v3134_v16  ;;  %v1272_v34 = vpop.f32.mrb[9].mxu1 }
 0x1d7   : > { %v1273_v35 = vadd.f32 %v3134_v16, %v1272_v34 }
 0x1d8   : > { %1561 = vst.msk [vmem:[%s3138_s12 + $0x48] sm:$0xff] %vm1551_vm1, %v1278_v33 }
 0x1d9   : > { %1560 = vst.msk [vmem:[%s3138_s12 + $0x40] sm:$0xff] %vm1551_vm1, %v1273_v35  ;;  %v2505_v36 = vpop.f32.mrb[10].mxu1 }
 0x1da   : > { %v1288_v37 = vadd.f32 %v2505_v36, %v3134_v16  ;;  %v1282_v38 = vpop.f32.mrb[11].mxu1 }
 0x1db   : > { %v1283_v39 = vadd.f32 %v3134_v16, %v1282_v38 }
 0x1dc   : > { %1563 = vst.msk [vmem:[%s3138_s12 + $0x58] sm:$0xff] %vm1551_vm1, %v1288_v37 }
 0x1dd   : > { %1562 = vst.msk [vmem:[%s3138_s12 + $0x50] sm:$0xff] %vm1551_vm1, %v1283_v39  ;;  %v2508_v40 = vpop.f32.mrb[12].mxu1 }
 0x1de   : > { %v1298_v41 = vadd.f32 %v2508_v40, %v3134_v16  ;;  %v1292_v42 = vpop.f32.mrb[13].mxu1 }
 0x1df   : > { %v1293_v43 = vadd.f32 %v3134_v16, %v1292_v42 }
 0x1e0   : > { %1565 = vst.msk [vmem:[%s3138_s12 + $0x68] sm:$0xff] %vm1551_vm1, %v1298_v41 }
 0x1e1   : > { %1564 = vst.msk [vmem:[%s3138_s12 + $0x60] sm:$0xff] %vm1551_vm1, %v1293_v43  ;;  %v2511_v44 = vpop.f32.mrb[14].mxu1 }
 0x1e2   : > { %v1308_v45 = vadd.f32 %v2511_v44, %v3134_v16  ;;  %v1302_v46 = vpop.f32.mrb[15].mxu1 }
 0x1e3   : > { %v1303_v47 = vadd.f32 %v3134_v16, %v1302_v46 }
 0x1e4   : > { %1567 = vst.msk [vmem:[%s3138_s12 + $0x78] sm:$0xff] %vm1551_vm1, %v1308_v45 }
 0x1e5   : > { %1566 = vst.msk [vmem:[%s3138_s12 + $0x70] sm:$0xff] %vm1551_vm1, %v1303_v47  ;;  %v2514_v48 = vpop.f32.mrb[16].mxu1 }
 0x1e6   : > { %v1318_v49 = vadd.f32 %v2514_v48, %v3134_v16  ;;  %v1312_v50 = vpop.f32.mrb[17].mxu1 }
 0x1e7   : > { %v1313_v51 = vadd.f32 %v3134_v16, %v1312_v50 }
 0x1e8   : > { %1569 = vst.msk [vmem:[%s3138_s12 + $0x88] sm:$0xff] %vm1551_vm1, %v1318_v49 }
 0x1e9   : > { %1568 = vst.msk [vmem:[%s3138_s12 + $0x80] sm:$0xff] %vm1551_vm1, %v1313_v51  ;;  %v2517_v52 = vpop.f32.mrb[18].mxu1 }
 0x1ea   : > { %v1328_v53 = vadd.f32 %v2517_v52, %v3134_v16  ;;  %v1322_v54 = vpop.f32.mrb[19].mxu1 }
 0x1eb   : > { %v1323_v55 = vadd.f32 %v3134_v16, %v1322_v54 }
 0x1ec   : > { %1571 = vst.msk [vmem:[%s3138_s12 + $0x98] sm:$0xff] %vm1551_vm1, %v1328_v53 }
 0x1ed   : > { %1570 = vst.msk [vmem:[%s3138_s12 + $0x90] sm:$0xff] %vm1551_vm1, %v1323_v55  ;;  %v2520_v56 = vpop.f32.mrb[20].mxu1 }
 0x1ee   : > { %v1338_v57 = vadd.f32 %v2520_v56, %v3134_v16  ;;  %v1332_v58 = vpop.f32.mrb[21].mxu1 }
 0x1ef   : > { %v1333_v59 = vadd.f32 %v3134_v16, %v1332_v58 }
 0x1f0   : > { %1573 = vst.msk [vmem:[%s3138_s12 + $0xa8] sm:$0xff] %vm1551_vm1, %v1338_v57 }
 0x1f1   : > { %1572 = vst.msk [vmem:[%s3138_s12 + $0xa0] sm:$0xff] %vm1551_vm1, %v1333_v59  ;;  %v2523_v60 = vpop.f32.mrb[22].mxu1 }
 0x1f2   : > { %v1348_v61 = vadd.f32 %v2523_v60, %v3134_v16  ;;  %v1342_v62 = vpop.f32.mrb[23].mxu1 }
 0x1f3   : > { %v1343_v63 = vadd.f32 %v3134_v16, %v1342_v62 }
 0x1f4   : > { %1575 = vst.msk [vmem:[%s3138_s12 + $0xb8] sm:$0xff] %vm1551_vm1, %v1348_v61 }
 0x1f5   : > { %1574 = vst.msk [vmem:[%s3138_s12 + $0xb0] sm:$0xff] %vm1551_vm1, %v1343_v63  ;;  %v2526_v0 = vpop.f32.mrb[24].mxu1 }
 0x1f6   : > { %v1358_v1 = vadd.f32 %v2526_v0, %v3134_v16  ;;  %v1352_v2 = vpop.f32.mrb[25].mxu1 }
 0x1f7   : > { %v1353_v3 = vadd.f32 %v3134_v16, %v1352_v2 }
 0x1f8   : > { %1577 = vst.msk [vmem:[%s3138_s12 + $0xc8] sm:$0xff] %vm1551_vm1, %v1358_v1 }
 0x1f9   : > { %1576 = vst.msk [vmem:[%s3138_s12 + $0xc0] sm:$0xff] %vm1551_vm1, %v1353_v3  ;;  %v2529_v4 = vpop.f32.mrb[26].mxu1 }
 0x1fa   : > { %v1368_v5 = vadd.f32 %v2529_v4, %v3134_v16  ;;  %v1362_v6 = vpop.f32.mrb[27].mxu1 }
 0x1fb   : > { %v1363_v7 = vadd.f32 %v3134_v16, %v1362_v6 }
 0x1fc   : > { %1579 = vst.msk [vmem:[%s3138_s12 + $0xd8] sm:$0xff] %vm1551_vm1, %v1368_v5 }
 0x1fd   : > { %1578 = vst.msk [vmem:[%s3138_s12 + $0xd0] sm:$0xff] %vm1551_vm1, %v1363_v7  ;;  %v2532_v8 = vpop.f32.mrb[28].mxu1 }
 0x1fe   : > { %v1378_v9 = vadd.f32 %v2532_v8, %v3134_v16  ;;  %v1372_v10 = vpop.f32.mrb[29].mxu1 }
 0x1ff   : > { %v1373_v11 = vadd.f32 %v3134_v16, %v1372_v10 }
 0x200   : > { %1581 = vst.msk [vmem:[%s3138_s12 + $0xe8] sm:$0xff] %vm1551_vm1, %v1378_v9 }
 0x201   : > { %1580 = vst.msk [vmem:[%s3138_s12 + $0xe0] sm:$0xff] %vm1551_vm1, %v1373_v11  ;;  %v2535_v13 = vpop.f32.mrb[30].mxu1 }
 0x202   : > { %v1388_v14 = vadd.f32 %v2535_v13, %v3134_v16  ;;  %v1382_v15 = vpop.f32.mrb[31].mxu1 }
 0x203   : > { %v1383_v17 = vadd.f32 %v3134_v16, %v1382_v15 }
 0x204   : > { %1583 = vst.msk [vmem:[%s3138_s12 + $0xf8] sm:$0xff] %vm1551_vm1, %v1388_v14 }
 0x205   : > { %1582 = vst.msk [vmem:[%s3138_s12 + $0xf0] sm:$0xff] %vm1551_vm1, %v1383_v17  ;;  %v2538_v12 = vpop.f32.mrb[32].mxu1 }
 0x206   : > { %v1398_v18 = vadd.f32 %v2538_v12, %v3134_v16  ;;  %v1392_v19 = vpop.f32.mrb[33].mxu1 }
 0x207   : > { %v1393_v20 = vadd.f32 %v3134_v16, %v1392_v19 }
 0x208   : > { %1585 = vst.msk [vmem:[%s3138_s12 + $0x108] sm:$0xff] %vm1551_vm1, %v1398_v18 }
 0x209   : > { %1584 = vst.msk [vmem:[%s3138_s12 + $0x100] sm:$0xff] %vm1551_vm1, %v1393_v20  ;;  %v2541_v21 = vpop.f32.mrb[34].mxu1 }
 0x20a   : > { %v1408_v22 = vadd.f32 %v2541_v21, %v3134_v16  ;;  %v1402_v23 = vpop.f32.mrb[35].mxu1 }
 0x20b   : > { %v1403_v24 = vadd.f32 %v3134_v16, %v1402_v23 }
 0x20c   : > { %1587 = vst.msk [vmem:[%s3138_s12 + $0x118] sm:$0xff] %vm1551_vm1, %v1408_v22 }
 0x20d   : > { %1586 = vst.msk [vmem:[%s3138_s12 + $0x110] sm:$0xff] %vm1551_vm1, %v1403_v24  ;;  %v2544_v25 = vpop.f32.mrb[36].mxu1 }
 0x20e   : > { %v1418_v26 = vadd.f32 %v2544_v25, %v3134_v16  ;;  %v1412_v27 = vpop.f32.mrb[37].mxu1 }
 0x20f   : > { %v1413_v28 = vadd.f32 %v3134_v16, %v1412_v27 }
 0x210   : > { %1589 = vst.msk [vmem:[%s3138_s12 + $0x128] sm:$0xff] %vm1551_vm1, %v1418_v26 }
 0x211   : > { %1588 = vst.msk [vmem:[%s3138_s12 + $0x120] sm:$0xff] %vm1551_vm1, %v1413_v28  ;;  %v2547_v29 = vpop.f32.mrb[38].mxu1 }
 0x212   : > { %v1428_v30 = vadd.f32 %v2547_v29, %v3134_v16  ;;  %v1422_v31 = vpop.f32.mrb[39].mxu1 }
 0x213   : > { %v1423_v32 = vadd.f32 %v3134_v16, %v1422_v31 }
 0x214   : > { %1591 = vst.msk [vmem:[%s3138_s12 + $0x138] sm:$0xff] %vm1551_vm1, %v1428_v30 }
 0x215   : > { %1590 = vst.msk [vmem:[%s3138_s12 + $0x130] sm:$0xff] %vm1551_vm1, %v1423_v32  ;;  %v2550_v33 = vpop.f32.mrb[40].mxu1 }
 0x216   : > { %v1438_v34 = vadd.f32 %v2550_v33, %v3134_v16  ;;  %v1432_v35 = vpop.f32.mrb[41].mxu1 }
 0x217   : > { %v1433_v36 = vadd.f32 %v3134_v16, %v1432_v35 }
 0x218   : > { %1593 = vst.msk [vmem:[%s3138_s12 + $0x148] sm:$0xff] %vm1551_vm1, %v1438_v34 }
 0x219   : > { %1592 = vst.msk [vmem:[%s3138_s12 + $0x140] sm:$0xff] %vm1551_vm1, %v1433_v36  ;;  %v2553_v37 = vpop.f32.mrb[42].mxu1 }
 0x21a   : > { %v1448_v38 = vadd.f32 %v2553_v37, %v3134_v16  ;;  %v1442_v39 = vpop.f32.mrb[43].mxu1 }
 0x21b   : > { %v1443_v40 = vadd.f32 %v3134_v16, %v1442_v39 }
 0x21c   : > { %1595 = vst.msk [vmem:[%s3138_s12 + $0x158] sm:$0xff] %vm1551_vm1, %v1448_v38 }
 0x21d   : > { %1594 = vst.msk [vmem:[%s3138_s12 + $0x150] sm:$0xff] %vm1551_vm1, %v1443_v40  ;;  %v2556_v41 = vpop.f32.mrb[44].mxu1 }
 0x21e   : > { %v1458_v42 = vadd.f32 %v2556_v41, %v3134_v16  ;;  %v1452_v43 = vpop.f32.mrb[45].mxu1 }
 0x21f   : > { %v1453_v44 = vadd.f32 %v3134_v16, %v1452_v43 }
 0x220   : > { %1597 = vst.msk [vmem:[%s3138_s12 + $0x168] sm:$0xff] %vm1551_vm1, %v1458_v42 }
 0x221   : > { %1596 = vst.msk [vmem:[%s3138_s12 + $0x160] sm:$0xff] %vm1551_vm1, %v1453_v44  ;;  %v2559_v45 = vpop.f32.mrb[46].mxu1 }
 0x222   : > { %v1468_v46 = vadd.f32 %v2559_v45, %v3134_v16  ;;  %v1462_v47 = vpop.f32.mrb[47].mxu1 }
 0x223   : > { %v1463_v48 = vadd.f32 %v3134_v16, %v1462_v47 }
 0x224   : > { %1599 = vst.msk [vmem:[%s3138_s12 + $0x178] sm:$0xff] %vm1551_vm1, %v1468_v46 }
 0x225   : > { %1598 = vst.msk [vmem:[%s3138_s12 + $0x170] sm:$0xff] %vm1551_vm1, %v1463_v48  ;;  %v2562_v49 = vpop.f32.mrb[48].mxu1 }
 0x226   : > { %v1478_v50 = vadd.f32 %v2562_v49, %v3134_v16  ;;  %v1472_v51 = vpop.f32.mrb[49].mxu1 }
 0x227   : > { %v1473_v52 = vadd.f32 %v3134_v16, %v1472_v51 }
 0x228   : > { %1601 = vst.msk [vmem:[%s3138_s12 + $0x188] sm:$0xff] %vm1551_vm1, %v1478_v50 }
 0x229   : > { %1600 = vst.msk [vmem:[%s3138_s12 + $0x180] sm:$0xff] %vm1551_vm1, %v1473_v52  ;;  %v2565_v53 = vpop.f32.mrb[50].mxu1 }
 0x22a   : > { %v1488_v54 = vadd.f32 %v2565_v53, %v3134_v16  ;;  %v1482_v55 = vpop.f32.mrb[51].mxu1 }
 0x22b   : > { %v1483_v56 = vadd.f32 %v3134_v16, %v1482_v55 }
 0x22c   : > { %1603 = vst.msk [vmem:[%s3138_s12 + $0x198] sm:$0xff] %vm1551_vm1, %v1488_v54 }
 0x22d   : > { %1602 = vst.msk [vmem:[%s3138_s12 + $0x190] sm:$0xff] %vm1551_vm1, %v1483_v56  ;;  %v2568_v57 = vpop.f32.mrb[52].mxu1 }
 0x22e   : > { %v1498_v58 = vadd.f32 %v2568_v57, %v3134_v16  ;;  %v1492_v59 = vpop.f32.mrb[53].mxu1 }
 0x22f   : > { %v1493_v60 = vadd.f32 %v3134_v16, %v1492_v59 }
 0x230   : > { %1605 = vst.msk [vmem:[%s3138_s12 + $0x1a8] sm:$0xff] %vm1551_vm1, %v1498_v58 }
 0x231   : > { %1604 = vst.msk [vmem:[%s3138_s12 + $0x1a0] sm:$0xff] %vm1551_vm1, %v1493_v60  ;;  %v2571_v61 = vpop.f32.mrb[54].mxu1 }
 0x232   : > { %v1508_v62 = vadd.f32 %v2571_v61, %v3134_v16  ;;  %v1502_v63 = vpop.f32.mrb[55].mxu1 }
 0x233   : > { %v1503_v0 = vadd.f32 %v3134_v16, %v1502_v63 }
 0x234   : > { %1607 = vst.msk [vmem:[%s3138_s12 + $0x1b8] sm:$0xff] %vm1551_vm1, %v1508_v62 }
 0x235   : > { %1606 = vst.msk [vmem:[%s3138_s12 + $0x1b0] sm:$0xff] %vm1551_vm1, %v1503_v0  ;;  %v2574_v1 = vpop.f32.mrb[56].mxu1 }
 0x236   : > { %v1518_v2 = vadd.f32 %v2574_v1, %v3134_v16  ;;  %v1512_v3 = vpop.f32.mrb[57].mxu1 }
 0x237   : > { %v1513_v4 = vadd.f32 %v3134_v16, %v1512_v3 }
 0x238   : > { %1609 = vst.msk [vmem:[%s3138_s12 + $0x1c8] sm:$0xff] %vm1551_vm1, %v1518_v2 }
 0x239   : > { %1608 = vst.msk [vmem:[%s3138_s12 + $0x1c0] sm:$0xff] %vm1551_vm1, %v1513_v4  ;;  %v2577_v5 = vpop.f32.mrb[58].mxu1 }
 0x23a   : > { %v1528_v6 = vadd.f32 %v2577_v5, %v3134_v16  ;;  %v1522_v7 = vpop.f32.mrb[59].mxu1 }
 0x23b   : > { %v1523_v8 = vadd.f32 %v3134_v16, %v1522_v7 }
 0x23c   : > { %1611 = vst.msk [vmem:[%s3138_s12 + $0x1d8] sm:$0xff] %vm1551_vm1, %v1528_v6 }
 0x23d   : > { %1610 = vst.msk [vmem:[%s3138_s12 + $0x1d0] sm:$0xff] %vm1551_vm1, %v1523_v8  ;;  %v2580_v9 = vpop.f32.mrb[60].mxu1 }
 0x23e   : > { %v1538_v10 = vadd.f32 %v2580_v9, %v3134_v16  ;;  %v1532_v11 = vpop.f32.mrb[61].mxu1 }
 0x23f   : > { %v1533_v13 = vadd.f32 %v3134_v16, %v1532_v11  ;;  %1622 = sbr.rel (!%p2831_p4) target bundleno = 654 (0x28e), region = 44 }
 0x240   : > { %1613 = vst.msk [vmem:[%s3138_s12 + $0x1e8] sm:$0xff] %vm1551_vm1, %v1538_v10 }
 0x241   : > { %1612 = vst.msk [vmem:[%s3138_s12 + $0x1e0] sm:$0xff] %vm1551_vm1, %v1533_v13  ;;  %v2583_v14 = vpop.f32.mrb[62].mxu1 }
 0x242   : > { %v1548_v15 = vadd.f32 %v2583_v14, %v3134_v16  ;;  %v1542_v17 = vpop.f32.mrb[63].mxu1 }
 0x243   : > { %v1543_v12 = vadd.f32 %v3134_v16, %v1542_v17 }
 0x244   : > { %1615 = vst.msk [vmem:[%s3138_s12 + $0x1f8] sm:$0xff] %vm1551_vm1, %v1548_v15 }
 0x245   : > { %1614 = vst.msk [vmem:[%s3138_s12 + $0x1f0] sm:$0xff] %vm1551_vm1, %v1543_v12 }
 0x246   : > { %s3552_s18 = smov (!%p1625_p8, %s1624_s18), 64 }
 0x247   : > { %s2222_s17 = sshll.u32 %s3552_s18, 7 }
 0x248   : > { %p2225_p9 = scmp.eq.s32.totalorder %s2222_s17, 0 }
 0x249   : > { %s3343_s20 = sshrl.u32 (!%p2225_p9), %s3552_s18, 6 }
 0x24a   : > { %1633 = sbr.rel (%p2225_p9) target bundleno = 654 (0x28e), region = 48  ;;  %p2226_p10 = scmp.le.s32.totalorder (!%p2225_p9), %s3343_s20, 0 }
 0x251   : > { %2039 = sbr.rel (%p2226_p10) target bundleno = 633 (0x279), region = 124  ;;  %s3543_s21 = smov (!%p2226_p10), %s3337_s16 }
 0x252   : > { %s3544_s26 = smov (!%p2226_p10), %s3138_s12  ;;  %s3352_s8 = smov (!%p2226_p10), 0  }
 0x253   : > { %s3354_s23 = smov (!%p2226_p10), 0  }
 0x258 LB: >> { %v1821_v16 = vld [vmem:[%s2750_s26] sm:$0xff]  ;;  %v1823_v18 = vld [vmem:[%s2750_s26 + $0x8] sm:$0xff]  ;;  %v1825_v19 = vld [vmem:[%s2750_s26 + $0x10] sm:$0xff]  ;;  %s1949_s24 = sadd.s32 1, %s2754_s8  ;;  %s1815_s23 = sadd.s32 1, %s2758_s23   ;;  %s2758_s23 = sphi %s3354_s23, %s1815_s23   ;;  %s2754_s8 = sphi %s3352_s8, %s3547_s8   ;;  %s2750_s26 = sphi %s3544_s26, %s3546_s26   ;;  %s2746_s21 = sphi %s3543_s21, %s3545_s21  }
 0x259   : >> { %1822 = vst [vmem:[%s2746_s21] sm:$0xff] %v1821_v16  ;;  %1824 = vst [vmem:[%s2746_s21 + $0x8] sm:$0xff] %v1823_v18  ;;  %v1827_v20 = vld [vmem:[%s2750_s26 + $0x18] sm:$0xff]  ;;  %v1829_v21 = vld [vmem:[%s2750_s26 + $0x20] sm:$0xff]  ;;  %p1950_p11 = scmp.ge.s32.totalorder %s1949_s24, %s3343_s20  ;;  %p1814_p12 = scmp.ge.s32.totalorder %s1815_s23, %s3343_s20 }
 0x25a   : >> { %1826 = vst [vmem:[%s2746_s21 + $0x10] sm:$0xff] %v1825_v19  ;;  %v1831_v22 = vld [vmem:[%s2750_s26 + $0x28] sm:$0xff]  ;;  %1828 = vst [vmem:[%s2746_s21 + $0x18] sm:$0xff] %v1827_v20  ;;  %v1833_v23 = vld [vmem:[%s2750_s26 + $0x30] sm:$0xff] }
 0x25b   : >> { %1830 = vst [vmem:[%s2746_s21 + $0x20] sm:$0xff] %v1829_v21  ;;  %1832 = vst [vmem:[%s2746_s21 + $0x28] sm:$0xff] %v1831_v22  ;;  %v1835_v24 = vld [vmem:[%s2750_s26 + $0x38] sm:$0xff]  ;;  %v1837_v25 = vld [vmem:[%s2750_s26 + $0x40] sm:$0xff]  ;;  %s3554_s24 = smov (%p1950_p11, %s1949_s24), 0 }
 0x25c   : >> { %1834 = vst [vmem:[%s2746_s21 + $0x30] sm:$0xff] %v1833_v23  ;;  %1836 = vst [vmem:[%s2746_s21 + $0x38] sm:$0xff] %v1835_v24  ;;  %v1839_v26 = vld [vmem:[%s2750_s26 + $0x48] sm:$0xff]  ;;  %v1841_v27 = vld [vmem:[%s2750_s26 + $0x50] sm:$0xff]  ;;  %s2227_s27 = sshll.u32 %s3554_s24, 9  ;;  %s3547_s8 = smov %s3554_s24 }
 0x25d   : >> { %1838 = vst [vmem:[%s2746_s21 + $0x40] sm:$0xff] %v1837_v25  ;;  %v1843_v28 = vld [vmem:[%s2750_s26 + $0x58] sm:$0xff]  ;;  %1840 = vst [vmem:[%s2746_s21 + $0x48] sm:$0xff] %v1839_v26  ;;  %v1845_v29 = vld [vmem:[%s2750_s26 + $0x60] sm:$0xff]  ;;  %s3410_s28 = scalar_lea.vmem %s3138_s12, %s2227_s27 [#allocation2]   ;;  %s3413_s29 = scalar_lea.vmem %s3337_s16, %s2227_s27  }
 0x25e   : >> { %1842 = vst [vmem:[%s2746_s21 + $0x50] sm:$0xff] %v1841_v27  ;;  %1844 = vst [vmem:[%s2746_s21 + $0x58] sm:$0xff] %v1843_v28  ;;  %v1847_v30 = vld [vmem:[%s2750_s26 + $0x68] sm:$0xff]  ;;  %v1849_v31 = vld [vmem:[%s2750_s26 + $0x70] sm:$0xff] }
 0x25f   : >> { %1846 = vst [vmem:[%s2746_s21 + $0x60] sm:$0xff] %v1845_v29  ;;  %1848 = vst [vmem:[%s2746_s21 + $0x68] sm:$0xff] %v1847_v30  ;;  %v1851_v32 = vld [vmem:[%s2750_s26 + $0x78] sm:$0xff]  ;;  %v1853_v33 = vld [vmem:[%s2750_s26 + $0x80] sm:$0xff] }
 0x260   : >> { %1850 = vst [vmem:[%s2746_s21 + $0x70] sm:$0xff] %v1849_v31  ;;  %v1855_v34 = vld [vmem:[%s2750_s26 + $0x88] sm:$0xff]  ;;  %1852 = vst [vmem:[%s2746_s21 + $0x78] sm:$0xff] %v1851_v32  ;;  %v1857_v35 = vld [vmem:[%s2750_s26 + $0x90] sm:$0xff] }
 0x261   : >> { %1854 = vst [vmem:[%s2746_s21 + $0x80] sm:$0xff] %v1853_v33  ;;  %1856 = vst [vmem:[%s2746_s21 + $0x88] sm:$0xff] %v1855_v34  ;;  %v1859_v36 = vld [vmem:[%s2750_s26 + $0x98] sm:$0xff]  ;;  %v1861_v37 = vld [vmem:[%s2750_s26 + $0xa0] sm:$0xff] }
 0x262   : >> { %1858 = vst [vmem:[%s2746_s21 + $0x90] sm:$0xff] %v1857_v35  ;;  %1860 = vst [vmem:[%s2746_s21 + $0x98] sm:$0xff] %v1859_v36  ;;  %v1863_v38 = vld [vmem:[%s2750_s26 + $0xa8] sm:$0xff]  ;;  %v1865_v39 = vld [vmem:[%s2750_s26 + $0xb0] sm:$0xff] }
 0x263   : >> { %1862 = vst [vmem:[%s2746_s21 + $0xa0] sm:$0xff] %v1861_v37  ;;  %v1867_v40 = vld [vmem:[%s2750_s26 + $0xb8] sm:$0xff]  ;;  %1864 = vst [vmem:[%s2746_s21 + $0xa8] sm:$0xff] %v1863_v38  ;;  %v1869_v41 = vld [vmem:[%s2750_s26 + $0xc0] sm:$0xff] }
 0x264   : >> { %1866 = vst [vmem:[%s2746_s21 + $0xb0] sm:$0xff] %v1865_v39  ;;  %1868 = vst [vmem:[%s2746_s21 + $0xb8] sm:$0xff] %v1867_v40  ;;  %v1871_v42 = vld [vmem:[%s2750_s26 + $0xc8] sm:$0xff]  ;;  %v1873_v43 = vld [vmem:[%s2750_s26 + $0xd0] sm:$0xff] }
 0x265   : >> { %1870 = vst [vmem:[%s2746_s21 + $0xc0] sm:$0xff] %v1869_v41  ;;  %1872 = vst [vmem:[%s2746_s21 + $0xc8] sm:$0xff] %v1871_v42  ;;  %v1875_v44 = vld [vmem:[%s2750_s26 + $0xd8] sm:$0xff]  ;;  %v1877_v45 = vld [vmem:[%s2750_s26 + $0xe0] sm:$0xff] }
 0x266   : >> { %1874 = vst [vmem:[%s2746_s21 + $0xd0] sm:$0xff] %v1873_v43  ;;  %v1879_v46 = vld [vmem:[%s2750_s26 + $0xe8] sm:$0xff]  ;;  %1876 = vst [vmem:[%s2746_s21 + $0xd8] sm:$0xff] %v1875_v44  ;;  %v1881_v47 = vld [vmem:[%s2750_s26 + $0xf0] sm:$0xff] }
 0x267   : >> { %1878 = vst [vmem:[%s2746_s21 + $0xe0] sm:$0xff] %v1877_v45  ;;  %1880 = vst [vmem:[%s2746_s21 + $0xe8] sm:$0xff] %v1879_v46  ;;  %v1883_v48 = vld [vmem:[%s2750_s26 + $0xf8] sm:$0xff]  ;;  %v1885_v49 = vld [vmem:[%s2750_s26 + $0x100] sm:$0xff] }
 0x268   : >> { %1882 = vst [vmem:[%s2746_s21 + $0xf0] sm:$0xff] %v1881_v47  ;;  %1884 = vst [vmem:[%s2746_s21 + $0xf8] sm:$0xff] %v1883_v48  ;;  %v1887_v50 = vld [vmem:[%s2750_s26 + $0x108] sm:$0xff]  ;;  %v1889_v51 = vld [vmem:[%s2750_s26 + $0x110] sm:$0xff] }
 0x269   : >> { %1886 = vst [vmem:[%s2746_s21 + $0x100] sm:$0xff] %v1885_v49  ;;  %v1891_v52 = vld [vmem:[%s2750_s26 + $0x118] sm:$0xff]  ;;  %1888 = vst [vmem:[%s2746_s21 + $0x108] sm:$0xff] %v1887_v50  ;;  %v1893_v53 = vld [vmem:[%s2750_s26 + $0x120] sm:$0xff] }
 0x26a   : >> { %1890 = vst [vmem:[%s2746_s21 + $0x110] sm:$0xff] %v1889_v51  ;;  %1892 = vst [vmem:[%s2746_s21 + $0x118] sm:$0xff] %v1891_v52  ;;  %v1895_v54 = vld [vmem:[%s2750_s26 + $0x128] sm:$0xff]  ;;  %v1897_v55 = vld [vmem:[%s2750_s26 + $0x130] sm:$0xff] }
 0x26b   : >> { %1894 = vst [vmem:[%s2746_s21 + $0x120] sm:$0xff] %v1893_v53  ;;  %1896 = vst [vmem:[%s2746_s21 + $0x128] sm:$0xff] %v1895_v54  ;;  %v1899_v56 = vld [vmem:[%s2750_s26 + $0x138] sm:$0xff]  ;;  %v1901_v57 = vld [vmem:[%s2750_s26 + $0x140] sm:$0xff] }
 0x26c   : >> { %1898 = vst [vmem:[%s2746_s21 + $0x130] sm:$0xff] %v1897_v55  ;;  %v1903_v58 = vld [vmem:[%s2750_s26 + $0x148] sm:$0xff]  ;;  %1900 = vst [vmem:[%s2746_s21 + $0x138] sm:$0xff] %v1899_v56  ;;  %v1905_v59 = vld [vmem:[%s2750_s26 + $0x150] sm:$0xff] }
 0x26d   : >> { %1902 = vst [vmem:[%s2746_s21 + $0x140] sm:$0xff] %v1901_v57  ;;  %1904 = vst [vmem:[%s2746_s21 + $0x148] sm:$0xff] %v1903_v58  ;;  %v1907_v60 = vld [vmem:[%s2750_s26 + $0x158] sm:$0xff]  ;;  %v1909_v61 = vld [vmem:[%s2750_s26 + $0x160] sm:$0xff] }
 0x26e   : >> { %1906 = vst [vmem:[%s2746_s21 + $0x150] sm:$0xff] %v1905_v59  ;;  %1908 = vst [vmem:[%s2746_s21 + $0x158] sm:$0xff] %v1907_v60  ;;  %v1911_v62 = vld [vmem:[%s2750_s26 + $0x168] sm:$0xff]  ;;  %v1913_v63 = vld [vmem:[%s2750_s26 + $0x170] sm:$0xff] }
 0x26f   : >> { %1910 = vst [vmem:[%s2746_s21 + $0x160] sm:$0xff] %v1909_v61  ;;  %v1915_v0 = vld [vmem:[%s2750_s26 + $0x178] sm:$0xff]  ;;  %1912 = vst [vmem:[%s2746_s21 + $0x168] sm:$0xff] %v1911_v62  ;;  %v1917_v1 = vld [vmem:[%s2750_s26 + $0x180] sm:$0xff] }
 0x270   : >> { %1914 = vst [vmem:[%s2746_s21 + $0x170] sm:$0xff] %v1913_v63  ;;  %1916 = vst [vmem:[%s2746_s21 + $0x178] sm:$0xff] %v1915_v0  ;;  %v1919_v2 = vld [vmem:[%s2750_s26 + $0x188] sm:$0xff]  ;;  %v1921_v3 = vld [vmem:[%s2750_s26 + $0x190] sm:$0xff] }
 0x271   : >> { %1918 = vst [vmem:[%s2746_s21 + $0x180] sm:$0xff] %v1917_v1  ;;  %1920 = vst [vmem:[%s2746_s21 + $0x188] sm:$0xff] %v1919_v2  ;;  %v1923_v4 = vld [vmem:[%s2750_s26 + $0x198] sm:$0xff]  ;;  %v1925_v5 = vld [vmem:[%s2750_s26 + $0x1a0] sm:$0xff] }
 0x272   : >> { %1922 = vst [vmem:[%s2746_s21 + $0x190] sm:$0xff] %v1921_v3  ;;  %v1927_v6 = vld [vmem:[%s2750_s26 + $0x1a8] sm:$0xff]  ;;  %1924 = vst [vmem:[%s2746_s21 + $0x198] sm:$0xff] %v1923_v4  ;;  %v1929_v7 = vld [vmem:[%s2750_s26 + $0x1b0] sm:$0xff]  ;;  %1817 = sbr.rel (!%p1814_p12) target bundleno = 600 (0x258), region = 130 }
 0x273   : >> { %1926 = vst [vmem:[%s2746_s21 + $0x1a0] sm:$0xff] %v1925_v5  ;;  %1928 = vst [vmem:[%s2746_s21 + $0x1a8] sm:$0xff] %v1927_v6  ;;  %v1931_v8 = vld [vmem:[%s2750_s26 + $0x1b8] sm:$0xff]  ;;  %v1933_v9 = vld [vmem:[%s2750_s26 + $0x1c0] sm:$0xff] }
 0x274   : >> { %1930 = vst [vmem:[%s2746_s21 + $0x1b0] sm:$0xff] %v1929_v7  ;;  %1932 = vst [vmem:[%s2746_s21 + $0x1b8] sm:$0xff] %v1931_v8  ;;  %v1935_v10 = vld [vmem:[%s2750_s26 + $0x1c8] sm:$0xff]  ;;  %v1937_v11 = vld [vmem:[%s2750_s26 + $0x1d0] sm:$0xff] }
 0x275   : >> { %1934 = vst [vmem:[%s2746_s21 + $0x1c0] sm:$0xff] %v1933_v9  ;;  %v1939_v13 = vld [vmem:[%s2750_s26 + $0x1d8] sm:$0xff]  ;;  %1936 = vst [vmem:[%s2746_s21 + $0x1c8] sm:$0xff] %v1935_v10  ;;  %v1941_v14 = vld [vmem:[%s2750_s26 + $0x1e0] sm:$0xff] }
 0x276   : >> { %1938 = vst [vmem:[%s2746_s21 + $0x1d0] sm:$0xff] %v1937_v11  ;;  %1940 = vst [vmem:[%s2746_s21 + $0x1d8] sm:$0xff] %v1939_v13  ;;  %v1943_v15 = vld [vmem:[%s2750_s26 + $0x1e8] sm:$0xff]  ;;  %v1945_v17 = vld [vmem:[%s2750_s26 + $0x1f0] sm:$0xff] }
 0x277   : >> { %1942 = vst [vmem:[%s2746_s21 + $0x1e0] sm:$0xff] %v1941_v14  ;;  %1944 = vst [vmem:[%s2746_s21 + $0x1e8] sm:$0xff] %v1943_v15  ;;  %v1947_v12 = vld [vmem:[%s2750_s26 + $0x1f8] sm:$0xff]  ;;  %s3546_s26 = smov %s3410_s28 }
 0x278   : >> { %1946 = vst [vmem:[%s2746_s21 + $0x1f0] sm:$0xff] %v1945_v17  ;;  %1948 = vst [vmem:[%s2746_s21 + $0x1f8] sm:$0xff] %v1947_v12  ;;  %s3545_s21 = smov %s3413_s29 }
 0x279 PF: > { %s3518_s30 = sand.u32 63, %s3552_s18   ;;  %s2238_s6 = sshll.u32 %s3343_s20, 9 }
 0x27a   : > { %s1960_s7 = scalar_lea.vmem %s3138_s12, %s2238_s6 [#allocation2]   ;;  %s1962_s9 = scalar_lea.vmem %s3337_s16, %s2238_s6  }
 0x27b   : > { %p2232_p13 = scmp.le.s32.totalorder %s3518_s30, 0 }
 0x27c   : > { %s2760_s10 = smov (!%p2232_p13), %s1962_s9   ;;  %s2764_s11 = smov (!%p2232_p13), %s1960_s7  }
 0x27d   : > { %2053 = sbr.rel (%p2232_p13) target bundleno = 654 (0x28e), region = 135  ;;  %s2768_s13 = smov (!%p2232_p13), 0  }
 0x27e   : > { %s2772_s14 = smov (!%p2232_p13), 0  }
 0x284 LB: >> { %v1972_v16 = vld [vmem:[%s2766_s11] sm:$0xff]  ;;  %s1974_s18 = sadd.s32 1, %s2770_s13  ;;  %s1966_s14 = sadd.s32 1, %s2774_s14   ;;  %s2774_s14 = sphi %s2772_s14, %s1966_s14   ;;  %s2770_s13 = sphi %s2768_s13, %s2769_s13   ;;  %s2766_s11 = sphi %s2764_s11, %s1979_s11   ;;  %s2762_s10 = sphi %s2760_s10, %s1980_s10  }
 0x285   : >> { %1973 = vst [vmem:[%s2762_s10] sm:$0xff] %v1972_v16  ;;  %p1975_p0 = scmp.ge.s32.totalorder %s1974_s18, %s3518_s30  ;;  %p1965_p1 = scmp.ge.s32.totalorder %s1966_s14, %s3518_s30 }
 0x287   : >> { %s3556_s18 = smov (%p1975_p0, %s1974_s18), 0  ;;  %1968 = sbr.rel (!%p1965_p1) target bundleno = 644 (0x284), region = 141 }
 0x288   : >> { %s2233_s12 = sshll.u32 %s3556_s18, 3  ;;  %s2769_s13 = smov %s3556_s18  }
 0x289   : >> { %s1979_s11 = scalar_lea.vmem %s1960_s7, %s2233_s12 [#allocation2]   ;;  %s1980_s10 = scalar_lea.vmem %s1962_s9, %s2233_s12  }
 0x28e PF: > { %p12_p2 = scmp.ge.s32.totalorder %s2821_s22, 4   ;;  %s3548_s18 = smov %s2738_s19 }
 0x28f   : > { %s3549_s19 = smov %s2829_s25  ;;  %s3550_s20 = smov %s2821_s22 }
 0x290   :  { %14 = sbr.rel (!%p12_p2) target bundleno = 2 (0x2), region = 152 }

</bundles_post_ra>
